<compile_context>
chip_gen: v5e
topology: v5e:2x2
jax: 0.10.0
libtpu: 0.0.40
codegen_flags: <defaults>
</compile_context>

<pallas_src>
import functools

import jax
import jax.numpy as jnp
from jax.experimental import pallas as pl
from jax.experimental.pallas import tpu as pltpu

EPS = 1e-5


def _tap_k(cin):
    """Per-tap contraction width: 4*Cin space-to-depth channels padded to a multiple of 16."""
    return ((4 * cin + 15) // 16) * 16


# -----------------------------------------------------------------------------
# Fused kernel: conv(7,2,3) [as ONE K=256 im2col matmul] + BN(eval, folded) +
# ReLU + MaxPool(3,2,1).  One grid step == one batch element.
# -----------------------------------------------------------------------------
def _stem_kernel(xcol_ref, w_ref, b_ref, o_ref, hbuf_ref, *, Ho, Wo, Ph, Pw):
    # xcol_ref : (1, Ho*Wo, K)     bf16   im2col'd input (K = 16 taps * tap_k channels)
    # w_ref    : (K, Cout)         bf16   folded conv+BN weights
    # b_ref    : (1, Cout)         f32    folded conv+BN bias
    # o_ref    : (1, Ph, Pw, Cout) f32    pooled output
    # hbuf_ref : (Ph, Wo, Cout)    f32    scratch: H-pooled rows (for strided W reads)
    cout = w_ref.shape[-1]

    # --- conv + folded BN scale: ONE MXU matmul (K=256), f32 accumulation ---
    acc = jnp.dot(xcol_ref[0], w_ref[...], preferred_element_type=jnp.float32)  # (Ho*Wo, Cout)

    # --- folded BN bias + ReLU (f32 epilogue; v5e has no bf16 VPU) ---
    y = jnp.maximum(acc + b_ref[...], 0.0)                                       # (Ho*Wo, Cout)

    # --- MaxPool2d(3, stride=2, pad=1), fused.  y >= 0 post-ReLU, so pad value 0 is
    #     exactly equivalent to PyTorch's implicit -inf padding. ---
    # H direction (in registers): pool row i needs conv rows {2i-1, 2i, 2i+1}; in the
    # flat (Ho*Wo, C) layout these are whole, sublane-aligned row blocks (Wo conv cols
    # per row), so only a relabeling reshape + aligned slices + one leading-axis concat.
    yh = y.reshape(Ph, 2 * Wo, cout)                      # slab i = conv rows {2i, 2i+1}
    ev = yh[:, :Wo, :]                                    # conv rows 2i
    od = yh[:, Wo:, :]                                    # conv rows 2i+1
    up = jnp.concatenate(                                 # conv rows 2i-1 (row -1 -> pad 0)
        [jnp.zeros((1, Wo, cout), jnp.float32), od[:-1]], axis=0)
    hmax = jnp.maximum(jnp.maximum(ev, od), up)           # (Ph, Wo, Cout)

    # W direction: stride-2 column selection is a sublane shuffle, so route it through a
    # small scratch (one aligned full store + two strided reads).  The third window
    # element (col 2j-1) is the odd column shifted by one pool position: XLU roll + select.
    hbuf_ref[...] = hmax
    even = hbuf_ref[:, pl.ds(0, Pw, 2), :]                # cols 2j
    odd = hbuf_ref[:, pl.ds(1, Pw, 2), :]                 # cols 2j+1
    j_idx = jax.lax.broadcasted_iota(jnp.int32, (Ph, Pw, cout), 1)
    left = jnp.where(j_idx == 0, 0.0, pltpu.roll(odd, shift=1, axis=1))   # cols 2j-1
    o_ref[0] = jnp.maximum(jnp.maximum(even, odd), left)


# -----------------------------------------------------------------------------
# Parameters: raw (PyTorch-like) init + folding / im2col-weight prep
# -----------------------------------------------------------------------------
def init_input_part(key, in_channel=3, out_channel=64):
    ks = jax.random.split(key, 6)
    fan_in = in_channel * 49
    w = jax.random.normal(ks[0], (out_channel, in_channel, 7, 7), jnp.float32) / fan_in ** 0.5
    b = 0.05 * jax.random.normal(ks[1], (out_channel,), jnp.float32)
    gamma = 1.0 + 0.1 * jax.random.normal(ks[2], (out_channel,), jnp.float32)
    beta = 0.1 * jax.random.normal(ks[3], (out_channel,), jnp.float32)
    rmean = 0.1 * jax.random.normal(ks[4], (out_channel,), jnp.float32)
    rvar = jax.random.uniform(ks[5], (out_channel,), jnp.float32, minval=0.5, maxval=1.5)
    return dict(w=w, b=b, gamma=gamma, beta=beta, rmean=rmean, rvar=rvar)


def prepare_kernel_params(p):
    """Fold eval-mode BN into the conv and lay out the 7x7/s2 kernel as ONE im2col
    matrix (16*tap_k, Cout) in bf16: tap t = ka*4+kb holds (kh, kw) = (2ka+p, 2kb+q)
    with s2d channel order (p*2+q)*Cin + ci, each tap's 4*Cin channels zero-padded to
    tap_k so taps are lane-aligned and K == 16*tap_k (== 256 for Cin=3)."""
    w, b = p["w"], p["b"]
    cout, cin = w.shape[0], w.shape[1]
    tk = _tap_k(cin)
    scale = p["gamma"] / jnp.sqrt(p["rvar"] + EPS)                   # (Cout,)
    bias = scale * (b - p["rmean"]) + p["beta"]                      # (Cout,)
    wf = w * scale[:, None, None, None]                              # BN scale folded into W
    wpad = jnp.pad(wf, ((0, 0), (0, 0), (0, 1), (0, 1)))             # (Cout, Cin, 8, 8), zeros
    w2 = wpad.reshape(cout, cin, 4, 2, 4, 2).transpose(2, 4, 3, 5, 1, 0)  # (ka,kb,p,q,ci,co)
    w2 = w2.reshape(16, 4 * cin, cout)
    w2 = jnp.pad(w2, ((0, 0), (0, tk - 4 * cin), (0, 0)))            # per-tap K: 12 -> 16
    wmat = w2.reshape(16 * tk, cout).astype(jnp.bfloat16)            # (256, Cout)
    return wmat, bias.reshape(1, cout).astype(jnp.float32)


# -----------------------------------------------------------------------------
# Forward wrapper: one-time layout/im2col prologue + single fused pallas_call
# -----------------------------------------------------------------------------
def input_part_forward(x_nchw, kernel_params):
    wmat, bias = kernel_params
    N, Cin, H, W = x_nchw.shape
    Cout = wmat.shape[-1]
    tk = _tap_k(Cin)
    assert wmat.shape[0] == 16 * tk
    # stride-2 conv + stride-2 pool shape contract (keeps the s2d/pool math exact)
    assert H % 4 == 0 and W % 4 == 0, "InputPart stem expects H, W divisible by 4"
    Ho, Wo = H // 2, W // 2            # Conv2d(7, stride=2, pad=3) output
    Ph, Pw = Ho // 2, Wo // 2          # MaxPool2d(3, stride=2, pad=1) output
    Hp, Wp = H + 6, W + 6

    # One-time layout prologue on the raw (~KB) input: NCHW->NHWC, pad 3, space-to-depth(2),
    # im2col over the 16 resulting 4x4/s1 taps (each tap lane-padded 12->16), bf16 cast.
    # Pure data movement that XLA fuses into a couple of cheap copies; all conv/BN/ReLU/pool
    # compute happens inside the single fused Pallas kernel.
    x = jnp.transpose(x_nchw, (0, 2, 3, 1))
    xp = jnp.pad(x, ((0, 0), (3, 3), (3, 3), (0, 0)))
    xs = xp.reshape(N, Hp // 2, 2, Wp // 2, 2, Cin)
    xs = xs.transpose(0, 1, 3, 2, 4, 5).reshape(N, Hp // 2, Wp // 2, 4 * Cin)
    xs = jnp.pad(xs, ((0, 0), (0, 0), (0, 0), (0, tk - 4 * Cin)))    # lane-align each tap
    cols = [xs[:, ka:ka + Ho, kb:kb + Wo, :] for ka in range(4) for kb in range(4)]
    xcol = jnp.concatenate(cols, axis=-1).reshape(N, Ho * Wo, 16 * tk).astype(jnp.bfloat16)

    kernel = functools.partial(_stem_kernel, Ho=Ho, Wo=Wo, Ph=Ph, Pw=Pw)
    out = pl.pallas_call(
        kernel,
        out_shape=jax.ShapeDtypeStruct((N, Ph, Pw, Cout), jnp.float32),
        grid_spec=pltpu.PrefetchScalarGridSpec(
            num_scalar_prefetch=0,
            grid=(N,),
            in_specs=[
                pl.BlockSpec((1, Ho * Wo, 16 * tk), lambda n: (n, 0, 0)),
                pl.BlockSpec((16 * tk, Cout), lambda n: (0, 0)),
                pl.BlockSpec((1, Cout), lambda n: (0, 0)),
            ],
            out_specs=pl.BlockSpec((1, Ph, Pw, Cout), lambda n: (n, 0, 0, 0)),
            scratch_shapes=[pltpu.VMEM((Ph, Wo, Cout), jnp.float32)],
        ),
        compiler_params=pltpu.CompilerParams(
            dimension_semantics=("parallel",),        # v7x: split the batch over 2 TCs
            vmem_limit_bytes=32 * 1024 * 1024,
        ),
    )(xcol, wmat, bias)
    # Back to NCHW to match the PyTorch module (an NHWC consumer could skip this transpose).
    return jnp.transpose(out, (0, 3, 1, 2))


# -----------------------------------------------------------------------------
# Pure-JAX f32 reference (independent of the s2d/im2col trick) for correctness
# -----------------------------------------------------------------------------
def reference_forward(x_nchw, p):
    w, b = p["w"], p["b"]
    N, Cin, H, W = x_nchw.shape
    Ho, Wo = H // 2, W // 2
    Ph, Pw = Ho // 2, Wo // 2
    x = jnp.transpose(x_nchw, (0, 2, 3, 1))
    xp = jnp.pad(x, ((0, 0), (3, 3), (3, 3), (0, 0)))
    acc = jnp.zeros((N, Ho, Wo, w.shape[0]), jnp.float32)
    for kh in range(7):
        for kw in range(7):
            patch = xp[:, kh:kh + 2 * Ho:2, kw:kw + 2 * Wo:2, :]
            acc = acc + jnp.einsum("nhwc,oc->nhwo", patch, w[:, :, kh, kw],
                                   precision=jax.lax.Precision.HIGHEST)
    y = (acc + b - p["rmean"]) / jnp.sqrt(p["rvar"] + EPS) * p["gamma"] + p["beta"]
    y = jnp.maximum(y, 0.0)
    yp = jnp.pad(y, ((0, 0), (1, 1), (1, 1), (0, 0)), constant_values=-jnp.inf)
    pooled = None
    for kh in range(3):
        for kw in range(3):
            win = yp[:, kh:kh + 2 * Ph:2, kw:kw + 2 * Pw:2, :]
            pooled = win if pooled is None else jnp.maximum(pooled, win)
    return jnp.transpose(pooled, (0, 3, 1, 2))


# -----------------------------------------------------------------------------
if __name__ == "__main__":
    key = jax.random.PRNGKey(0)
    pkey, xkey = jax.random.split(key)

    raw_params = init_input_part(pkey, in_channel=3, out_channel=64)
    kernel_params = prepare_kernel_params(raw_params)

    # PyTorch-style NCHW input to InputPart: (batch=2, C=3, H=32, W=32)
    x_nchw = jax.random.normal(xkey, (2, 3, 32, 32), jnp.float32)

    forward = jax.jit(input_part_forward)
    y = forward(x_nchw, kernel_params)
    jax.block_until_ready(y)

    # 32 -> conv/s2 -> 16 -> pool/s2 -> 8 spatially, 3 -> 64 channels
    assert y.shape == (2, 64, 8, 8), y.shape
    assert bool(jnp.all(jnp.isfinite(y)))

    # Validate against an independent f32 reference (kernel uses bf16 MXU operands,
    # so tolerance is loose; a structural bug would show O(1) errors).
    ref = reference_forward(x_nchw, raw_params)
    max_err = float(jnp.max(jnp.abs(y - ref)))
    assert max_err < 0.2, f"max |err| = {max_err}"

    print("KERNEL_OK")
</pallas_src>

<mosaic_0001>
module attributes {stable_mosaic.version = 11 : i64} {
  func.func @_stem_kernel(%arg0: i32, %arg1: memref<1x256x256xbf16, #tpu.memory_space<vmem>>, %arg2: memref<256x64xbf16, #tpu.memory_space<vmem>>, %arg3: memref<1x64xf32, #tpu.memory_space<vmem>>, %arg4: memref<1x8x8x64xf32, #tpu.memory_space<vmem>>, %arg5: memref<8x16x64xf32, #tpu.memory_space<vmem>>) attributes {dimension_semantics = [#tpu.dimension_semantics<parallel>], iteration_bounds = array<i64: 2>, scalar_prefetch = 0 : i64, scratch_operands = 1 : i64, tpu.core_type = #tpu.core_type<tc>, window_params = [{transform_indices = @transform_0, window_bounds = array<i64: 1, 256, 256>}, {pipeline_mode = #tpu.pipeline_mode<synchronous>, transform_indices = @transform_1, window_bounds = array<i64: 256, 64>}, {pipeline_mode = #tpu.pipeline_mode<synchronous>, transform_indices = @transform_2, window_bounds = array<i64: 1, 64>}, {transform_indices = @transform_3, window_bounds = array<i64: 1, 8, 8, 64>}]} {
    %c0 = arith.constant 0 : index
    %c0_0 = arith.constant 0 : index
    %c0_1 = arith.constant 0 : index
    %0 = vector.load %arg1[%c0, %c0_0, %c0_1] : memref<1x256x256xbf16, #tpu.memory_space<vmem>>, vector<1x256x256xbf16>
    %1 = vector.shape_cast %0 : vector<1x256x256xbf16> to vector<256x256xbf16>
    %c0_2 = arith.constant 0 : index
    %c0_3 = arith.constant 0 : index
    %2 = vector.load %arg2[%c0_2, %c0_3] : memref<256x64xbf16, #tpu.memory_space<vmem>>, vector<256x64xbf16>
    %cst = arith.constant dense<0.000000e+00> : vector<256x64xf32>
    %3 = tpu.matmul %1, %2, %cst {dimension_numbers = #tpu.dot_dimension_numbers<[1], [0], [0], [1], [0, 0, 1, 1], [], []>} : vector<256x256xbf16>, vector<256x64xbf16>, vector<256x64xf32> -> vector<256x64xf32>
    %c0_4 = arith.constant 0 : index
    %c0_5 = arith.constant 0 : index
    %4 = vector.load %arg3[%c0_4, %c0_5] : memref<1x64xf32, #tpu.memory_space<vmem>>, vector<1x64xf32>
    %5 = vector.broadcast %4 : vector<1x64xf32> to vector<256x64xf32>
    %6 = arith.addf %3, %5 : vector<256x64xf32>
    %cst_6 = arith.constant 0.000000e+00 : f32
    %7 = vector.broadcast %cst_6 : f32 to vector<256x64xf32>
    %8 = arith.maximumf %6, %7 : vector<256x64xf32>
    %9 = vector.shape_cast %8 : vector<256x64xf32> to vector<8x32x64xf32>
    %10 = vector.extract_strided_slice %9 {offsets = [0, 0, 0], sizes = [8, 16, 64], strides = [1, 1, 1]} : vector<8x32x64xf32> to vector<8x16x64xf32>
    %11 = vector.extract_strided_slice %9 {offsets = [0, 16, 0], sizes = [8, 16, 64], strides = [1, 1, 1]} : vector<8x32x64xf32> to vector<8x16x64xf32>
    %cst_7 = arith.constant 0.000000e+00 : f32
    %12 = vector.broadcast %cst_7 : f32 to vector<1x16x64xf32>
    %13 = vector.extract_strided_slice %11 {offsets = [0, 0, 0], sizes = [7, 16, 64], strides = [1, 1, 1]} : vector<8x16x64xf32> to vector<7x16x64xf32>
    %14 = tpu.concatenate %12, %13 in 0 : vector<1x16x64xf32>, vector<7x16x64xf32> -> vector<8x16x64xf32>
    %15 = arith.maximumf %10, %11 : vector<8x16x64xf32>
    %16 = arith.maximumf %15, %14 : vector<8x16x64xf32>
    %c0_8 = arith.constant 0 : index
    %c0_9 = arith.constant 0 : index
    %c0_10 = arith.constant 0 : index
    %17 = vector.load %arg5[%c0_8, %c0_9, %c0_10] : memref<8x16x64xf32, #tpu.memory_space<vmem>>, vector<8x16x64xf32>
    tpu.vector_store %arg5[%c0_8, %c0_9, %c0_10], %16 {strides = array<i32>} : memref<8x16x64xf32, #tpu.memory_space<vmem>>, vector<8x16x64xf32>,
    %c0_11 = arith.constant 0 : index
    %c0_12 = arith.constant 0 : index
    %c0_13 = arith.constant 0 : index
    %18 = tpu.strided_load %arg5[%c0_11, %c0_12, %c0_13] {strides = array<i32: 1, 2, 1>} : memref<8x16x64xf32, #tpu.memory_space<vmem>>, vector<8x8x64xf32>
    %c0_14 = arith.constant 0 : index
    %c1 = arith.constant 1 : index
    %c0_15 = arith.constant 0 : index
    %19 = tpu.strided_load %arg5[%c0_14, %c1, %c0_15] {strides = array<i32: 1, 2, 1>} : memref<8x16x64xf32, #tpu.memory_space<vmem>>, vector<8x8x64xf32>
    %20 = tpu.iota {dimensions = array<i32: 1>} : vector<8x8x64xi32>
    %c0_i32 = arith.constant 0 : i32
    %21 = vector.broadcast %c0_i32 : i32 to vector<8x8x64xi32>
    %22 = arith.cmpi eq, %20, %21 : vector<8x8x64xi32>
    %c1_i32 = arith.constant 1 : i32
    %23 = tpu.dynamic_rotate %19 by %c1_i32 dim 1 : vector<8x8x64xf32>, i32 -> vector<8x8x64xf32>
    %cst_16 = arith.constant 0.000000e+00 : f32
    %24 = vector.broadcast %cst_16 : f32 to vector<8x8x64xf32>
    %25 = arith.select %22, %24, %23 : vector<8x8x64xi1>, vector<8x8x64xf32>
    %26 = arith.maximumf %18, %19 : vector<8x8x64xf32>
    %27 = arith.maximumf %26, %25 : vector<8x8x64xf32>
    %c0_17 = arith.constant 0 : index
    %c0_18 = arith.constant 0 : index
    %c0_19 = arith.constant 0 : index
    %c0_20 = arith.constant 0 : index
    %28 = vector.load %arg4[%c0_17, %c0_18, %c0_19, %c0_20] : memref<1x8x8x64xf32, #tpu.memory_space<vmem>>, vector<1x8x8x64xf32>
    %29 = vector.shape_cast %28 : vector<1x8x8x64xf32> to vector<8x8x64xf32>
    %30 = vector.shape_cast %27 : vector<8x8x64xf32> to vector<1x8x8x64xf32>
    tpu.vector_store %arg4[%c0_17, %c0_18, %c0_19, %c0_20], %30 {strides = array<i32>} : memref<1x8x8x64xf32, #tpu.memory_space<vmem>>, vector<1x8x8x64xf32>,
    return
  }
  func.func @transform_0(%arg0: i32) -> (i32, i32, i32) {
    %c0_i32 = arith.constant 0 : i32
    %c0_i32_0 = arith.constant 0 : i32
    %c0_i32_1 = arith.constant 0 : i32
    return %arg0, %c0_i32, %c0_i32_0 : i32, i32, i32
  }
  func.func @transform_1(%arg0: i32) -> (i32, i32) {
    %c0_i32 = arith.constant 0 : i32
    %c0_i32_0 = arith.constant 0 : i32
    %c0_i32_1 = arith.constant 0 : i32
    return %c0_i32, %c0_i32_0 : i32, i32
  }
  func.func @transform_2(%arg0: i32) -> (i32, i32) {
    %c0_i32 = arith.constant 0 : i32
    %c0_i32_0 = arith.constant 0 : i32
    %c0_i32_1 = arith.constant 0 : i32
    return %c0_i32, %c0_i32_0 : i32, i32
  }
  func.func @transform_3(%arg0: i32) -> (i32, i32, i32, i32) {
    %c0_i32 = arith.constant 0 : i32
    %c0_i32_0 = arith.constant 0 : i32
    %c0_i32_1 = arith.constant 0 : i32
    %c0_i32_2 = arith.constant 0 : i32
    return %arg0, %c0_i32, %c0_i32_0, %c0_i32_1 : i32, i32, i32, i32
  }
}

</mosaic_0001>

<bundles_post_ra>
// kernel: input_part_forward.1
= control target key start
LH: loop header
LB: loop body
LE: loop exit
PB: predicated region body
PF: predicated region fallthrough
CT: control target
= control target key end

     0   :  { %8 = vsyncpa [#allocation4], 0  ;;  %s1685_s0 = inlined_call_operand.vmem [shape: bf16[2,256,256], index: 0, kind: input, shape index: {}]   ;;  %s1686_s1 = inlined_call_operand.vmem [shape: bf16[256,64], index: 1, kind: input, shape index: {}]   ;;  %s1687_s2 = inlined_call_operand.vmem [shape: f32[1,64], index: 2, kind: input, shape index: {}]   ;;  %s1688_s3 = inlined_call_operand.hbm [shape: f32[2,8,8,64], index: 3, kind: output, shape index: {}]  }
   0x1   :  { %10 = vsyncpa [#allocation4 + $0x1], 0  ;;  %s1302_s12 = smov 0   ;;  %s1304_s13 = smov 0  }
   0x2   :  { %s1306_s14 = smov 0   ;;  %s1308_s15 = smov 0  }
   0x3 LB: > { %s1323_s16 = sadd.s32 4294967295, %s1278_s15   ;;  %s904_s17 = sadd.s32 4294967294, %s1278_s15   ;;  %s1278_s15 = sphi %s1308_s15, %s1694_s15   ;;  %s1274_s14 = sphi %s1306_s14, %s1693_s14   ;;  %s1270_s13 = sphi %s1304_s13, %s1692_s13   ;;  %s1266_s12 = sphi %s1302_s12, %s1691_s12  }
   0x4   : > { %s1327_s18 = sadd.s32 1, %s1278_s15   ;;  %s91_s19 = sadd.s32 1, %s1274_s14 }
   0x5   : > { %s88_s20 = ssub.s32 %s1278_s15, %s1327_s18  ;;  %p101_p0 = scmp.ne.s32.totalorder %s1274_s14, %s1270_s13 }
   0x6   : > { %p89_p1 = scmp.eq.s32.totalorder %s88_s20, 0  ;;  %p102_p2 = scmp.eq.s32.totalorder %s1323_s16, 1 }
   0x7   : > { %p107_p3 = scmp.ne.s32.totalorder %s1270_s13, %s1266_s12  ;;  %p108_p4 = scmp.eq.s32.totalorder %s904_s17, 1 }
   0x8   : > { %s1338_s21 = scalar_select %p89_p1, %s1274_s14, %s91_s19  }
   0x9   : > { %p1340_p5 = por %p102_p2, %p101_p0  ;;  %p1344_p6 = por %p108_p4, %p107_p3 }
   0xa   : > { %p907_p7 = scmp.ge.s32.totalorder %s1278_s15, 1  ;;  %p140_p8 = scmp.lt.s32.totalorder %s1278_s15, 3 }
   0xc   : > { %p141_p9 = pnand %p907_p7, %p140_p8 }
   0xd   : > { %p164_p10 = scmp.lt.s32.totalorder (!%p141_p9), %s1323_s16, 1  ;;  %s161_s27 = sand.u32 (!%p141_p9), 1, %s1270_s13  }
   0xe   : > { %144 = sbr.rel (%p141_p9) target bundleno = 330 (0x14a), region = 32  ;;  %s908_s28 = sshll.u32 (!%p141_p9), %s161_s27, 6 }
   0xf   : > { %s1505_s29 = scalar_lea.vmem (!%p141_p9), [#allocation3], %s908_s28  ;;  %s1157_s30 = sshll.u32 (!%p141_p9), %s1323_s16, 6 }
  0x10   : > { %s838_s6 = scalar_lea.hbm (!%p141_p9), %s1688_s3, %s1157_s30  ;;  %s839_s7 = sshll.u32 (!%p141_p9), %s1505_s29, 4  ;;  %s840_s7 = int_to_ptr.vmem [resolvable:$true] %s839_s7 }
  0x11   : > { %s827_s8 = scalar_lea.sflag (!%p141_p9), [#allocation4], %s161_s27  ;;  %s1236_s19 = scalar_lea.hbm (!%p141_p9), %s1688_s3, 128 }
  0x13   : > { %v1148_v0 = vld [vmem:[%s1686_s1 + $0x38] sm:$0xff]  ;;  %v1147_v2 = vld [vmem:[%s1686_s1 + $0x30] sm:$0xff]  ;;  %v1146_v4 = vld [vmem:[%s1686_s1 + $0x28] sm:$0xff]  ;;  %s165_s26 = scalar_select %p164_p10, %s1323_s16, 1  ;;  %vm735_vm0 = vcmask 523264  }
  0x14   : > { %v1156_v1 = vld [vmem:[%s1686_s1 + $0x78] sm:$0xff]  ;;  %493 = vmatpush.bf16.msra.mxu0 %v1148_v0  ;;  %1158 = vmatpush.bf16.msra.mxu2 %v1148_v0  ;;  %v1155_v3 = vld [vmem:[%s1686_s1 + $0x70] sm:$0xff]  ;;  %v1154_v5 = vld [vmem:[%s1686_s1 + $0x68] sm:$0xff]  ;;  %s841_s16 = sshll.u32 %s838_s6, 4  ;;  %s842_s16 = int_to_ptr.hbm [resolvable:$true] %s841_s16 }
  0x15   : > { %582 = vmatpush.bf16.msra.mxu1 %v1156_v1  ;;  %1166 = vmatpush.bf16.msra.mxu3 %v1156_v1  ;;  %v1145_v6 = vld [vmem:[%s1686_s1 + $0x20] sm:$0xff]  ;;  %v1144_v8 = vld [vmem:[%s1686_s1 + $0x18] sm:$0xff]  ;;  %v1143_v10 = vld [vmem:[%s1686_s1 + $0x10] sm:$0xff]  ;;  %s1108_s4 = sshll.u32 %s165_s26, 8 }
  0x16   : > { %v1153_v7 = vld [vmem:[%s1686_s1 + $0x60] sm:$0xff]  ;;  %v1152_v9 = vld [vmem:[%s1686_s1 + $0x58] sm:$0xff]  ;;  %v1151_v11 = vld [vmem:[%s1686_s1 + $0x50] sm:$0xff]  ;;  %s1394_s9 = scalar_lea.vmem %s1685_s0, %s1108_s4 }
  0x17   : > { %v1142_v12 = vld [vmem:[%s1686_s1 + $0x8] sm:$0xff]  ;;  %v1141_v14 = vld [vmem:[%s1686_s1] sm:$0xff]  ;;  %v921_v28 = vld [vmem:[%s1394_s9 + $0x10] sm:$0xf] }
  0x18   : > { %494 = vmatpush.bf16.msra.mxu0 %v1147_v2  ;;  %1159 = vmatpush.bf16.msra.mxu2 %v1147_v2  ;;  %v1150_v13 = vld [vmem:[%s1686_s1 + $0x48] sm:$0xff]  ;;  %v1149_v15 = vld [vmem:[%s1686_s1 + $0x40] sm:$0xff]  ;;  %v1112_v29 = vld [vmem:[%s1394_s9 + $0x14] sm:$0xf0] }
  0x19   : > { %583 = vmatpush.bf16.msra.mxu1 %v1155_v3  ;;  %1167 = vmatpush.bf16.msra.mxu3 %v1155_v3  ;;  %v913_v16 = vld [vmem:[%s1394_s9] sm:$0xf]  ;;  %v1110_v17 = vld [vmem:[%s1394_s9 + $0x4] sm:$0xf0]  ;;  %v1109_v20 = vld [vmem:[%s1394_s9 + $0x4] sm:$0xf]  ;;  %v922_v36 = vor.u32 %v1112_v29, %v921_v28 }
  0x1a   : > { %v977_v18 = vld [vmem:[%s1394_s9 + $0x80] sm:$0xf]  ;;  %v1126_v19 = vld [vmem:[%s1394_s9 + $0x84] sm:$0xf0]  ;;  %v915_v21 = vld [vmem:[%s1394_s9 + $0x8] sm:$0xf0]  ;;  %v914_v24 = vor.u32 %v1110_v17, %v913_v16 }
  0x1b   : > { %v1125_v22 = vld [vmem:[%s1394_s9 + $0x84] sm:$0xf]  ;;  %v979_v23 = vld [vmem:[%s1394_s9 + $0x88] sm:$0xf0]  ;;  %v978_v25 = vor.u32 %v1126_v19, %v977_v18  ;;  %v918_v26 = vor.u32 %v1109_v20, %v915_v21  ;;  %v985_v30 = vld [vmem:[%s1394_s9 + $0x90] sm:$0xf] }
  0x1c   : > { %495 = vmatpush.bf16.msra.mxu0 %v1146_v4  ;;  %1160 = vmatpush.bf16.msra.mxu2 %v1146_v4  ;;  %v982_v27 = vor.u32 %v1125_v22, %v979_v23  ;;  %v1128_v31 = vld [vmem:[%s1394_s9 + $0x94] sm:$0xf0]  ;;  %v1111_v32 = vld [vmem:[%s1394_s9 + $0x14] sm:$0xf]  ;;  %v923_v33 = vld [vmem:[%s1394_s9 + $0x18] sm:$0xf0] }
  0x1d   : > { %584 = vmatpush.bf16.msra.mxu1 %v1154_v5  ;;  %1168 = vmatpush.bf16.msra.mxu3 %v1154_v5  ;;  %v1127_v34 = vld [vmem:[%s1394_s9 + $0x94] sm:$0xf]  ;;  %v987_v35 = vld [vmem:[%s1394_s9 + $0x98] sm:$0xf0]  ;;  %v986_v37 = vor.u32 %v1128_v31, %v985_v30  ;;  %v926_v38 = vor.u32 %v1111_v32, %v923_v33  ;;  %v929_v40 = vld [vmem:[%s1394_s9 + $0x20] sm:$0xf] }
  0x1e   : > { %v990_v39 = vor.u32 %v1127_v34, %v987_v35  ;;  %v1114_v41 = vld [vmem:[%s1394_s9 + $0x24] sm:$0xf0]  ;;  %v993_v42 = vld [vmem:[%s1394_s9 + $0xa0] sm:$0xf]  ;;  %v1113_v44 = vld [vmem:[%s1394_s9 + $0x24] sm:$0xf] }
  0x1f   : > { %v1130_v43 = vld [vmem:[%s1394_s9 + $0xa4] sm:$0xf0]  ;;  %v931_v45 = vld [vmem:[%s1394_s9 + $0x28] sm:$0xf0]  ;;  %v1129_v46 = vld [vmem:[%s1394_s9 + $0xa4] sm:$0xf]  ;;  %v930_v48 = vor.u32 %v1114_v41, %v929_v40 }
  0x20   : > { %496 = vmatpush.bf16.msra.mxu0 %v1145_v6  ;;  %1161 = vmatpush.bf16.msra.mxu2 %v1145_v6  ;;  %v995_v47 = vld [vmem:[%s1394_s9 + $0xa8] sm:$0xf0]  ;;  %v994_v49 = vor.u32 %v1130_v43, %v993_v42  ;;  %v934_v50 = vor.u32 %v1113_v44, %v931_v45  ;;  %v937_v52 = vld [vmem:[%s1394_s9 + $0x30] sm:$0xf]  ;;  %v1116_v53 = vld [vmem:[%s1394_s9 + $0x34] sm:$0xf0] }
  0x21   : > { %585 = vmatpush.bf16.msra.mxu1 %v1153_v7  ;;  %1169 = vmatpush.bf16.msra.mxu3 %v1153_v7  ;;  %v998_v51 = vor.u32 %v1129_v46, %v995_v47  ;;  %v1001_v54 = vld [vmem:[%s1394_s9 + $0xb0] sm:$0xf]  ;;  %v1132_v55 = vld [vmem:[%s1394_s9 + $0xb4] sm:$0xf0]  ;;  %v1115_v56 = vld [vmem:[%s1394_s9 + $0x34] sm:$0xf]  ;;  %v938_v60 = vor.u32 %v1116_v53, %v937_v52 }
  0x22   : > { %v939_v57 = vld [vmem:[%s1394_s9 + $0x38] sm:$0xf0]  ;;  %v1131_v58 = vld [vmem:[%s1394_s9 + $0xb4] sm:$0xf]  ;;  %v1002_v61 = vor.u32 %v1132_v55, %v1001_v54  ;;  %v945_v0 = vld [vmem:[%s1394_s9 + $0x40] sm:$0xf] }
  0x23   : > { %v1003_v59 = vld [vmem:[%s1394_s9 + $0xb8] sm:$0xf0]  ;;  %v942_v62 = vor.u32 %v1115_v56, %v939_v57  ;;  %v1118_v1 = vld [vmem:[%s1394_s9 + $0x44] sm:$0xf0]  ;;  %v1009_v2 = vld [vmem:[%s1394_s9 + $0xc0] sm:$0xf] }
  0x24   : > { %497 = vmatpush.bf16.msra.mxu0 %v1144_v8  ;;  %1162 = vmatpush.bf16.msra.mxu2 %v1144_v8  ;;  %v1006_v63 = vor.u32 %v1131_v58, %v1003_v59  ;;  %v1134_v3 = vld [vmem:[%s1394_s9 + $0xc4] sm:$0xf0]  ;;  %v1117_v4 = vld [vmem:[%s1394_s9 + $0x44] sm:$0xf]  ;;  %v947_v5 = vld [vmem:[%s1394_s9 + $0x48] sm:$0xf0]  ;;  %v946_v8 = vor.u32 %v1118_v1, %v945_v0 }
  0x25   : > { %586 = vmatpush.bf16.msra.mxu1 %v1152_v9  ;;  %1170 = vmatpush.bf16.msra.mxu3 %v1152_v9  ;;  %v1133_v6 = vld [vmem:[%s1394_s9 + $0xc4] sm:$0xf]  ;;  %v1011_v7 = vld [vmem:[%s1394_s9 + $0xc8] sm:$0xf0]  ;;  %v1010_v9 = vor.u32 %v1134_v3, %v1009_v2  ;;  %v1119_v16 = vld [vmem:[%s1394_s9 + $0x54] sm:$0xf] }
  0x26   : > { %v955_v17 = vld [vmem:[%s1394_s9 + $0x58] sm:$0xf0]  ;;  %v1135_v18 = vld [vmem:[%s1394_s9 + $0xd4] sm:$0xf]  ;;  %v1121_v28 = vld [vmem:[%s1394_s9 + $0x64] sm:$0xf] }
  0x27   : > { %v1019_v19 = vld [vmem:[%s1394_s9 + $0xd8] sm:$0xf0]  ;;  %v958_v22 = vor.u32 %v1119_v16, %v955_v17  ;;  %v963_v29 = vld [vmem:[%s1394_s9 + $0x68] sm:$0xf0]  ;;  %v1137_v30 = vld [vmem:[%s1394_s9 + $0xe4] sm:$0xf] }
  0x28   : > { %498 = vmatpush.bf16.msra.mxu0 %v1143_v10  ;;  %1163 = vmatpush.bf16.msra.mxu2 %v1143_v10  ;;  %v950_v10 = vor.u32 %v1117_v4, %v947_v5  ;;  %v1022_v23 = vor.u32 %v1135_v18, %v1019_v19  ;;  %v1027_v31 = vld [vmem:[%s1394_s9 + $0xe8] sm:$0xf0]  ;;  %v966_v34 = vor.u32 %v1121_v28, %v963_v29  ;;  %v1123_v40 = vld [vmem:[%s1394_s9 + $0x74] sm:$0xf]  ;;  %v971_v41 = vld [vmem:[%s1394_s9 + $0x78] sm:$0xf0] }
  0x29   : > { %587 = vmatpush.bf16.msra.mxu1 %v1151_v11  ;;  %1171 = vmatpush.bf16.msra.mxu3 %v1151_v11  ;;  %v1014_v11 = vor.u32 %v1133_v6, %v1011_v7  ;;  %v1030_v35 = vor.u32 %v1137_v30, %v1027_v31  ;;  %v1139_v42 = vld [vmem:[%s1394_s9 + $0xf4] sm:$0xf]  ;;  %v1035_v43 = vld [vmem:[%s1394_s9 + $0xf8] sm:$0xf0]  ;;  %v974_v46 = vor.u32 %v1123_v40, %v971_v41 }
  0x2a   : > { %v1038_v47 = vor.u32 %v1139_v42, %v1035_v43 }
  0x2c   : > { %499 = vmatpush.bf16.msra.mxu0 %v1142_v12  ;;  %1164 = vmatpush.bf16.msra.mxu2 %v1142_v12  ;;  %v953_v12 = vld [vmem:[%s1394_s9 + $0x50] sm:$0xf] }
  0x2d   : > { %588 = vmatpush.bf16.msra.mxu1 %v1150_v13  ;;  %1172 = vmatpush.bf16.msra.mxu3 %v1150_v13  ;;  %v1120_v13 = vld [vmem:[%s1394_s9 + $0x54] sm:$0xf0] }
  0x2e   : > { %v954_v20 = vor.u32 %v1120_v13, %v953_v12 }
  0x30   : > { %500 = vmatpush.bf16.msra.mxu0 %v1141_v14  ;;  %1165 = vmatpush.bf16.msra.mxu2 %v1141_v14  ;;  %v1017_v14 = vld [vmem:[%s1394_s9 + $0xd0] sm:$0xf] }
  0x31   : > { %589 = vmatpush.bf16.msra.mxu1 %v1149_v15  ;;  %1173 = vmatpush.bf16.msra.mxu3 %v1149_v15  ;;  %v1136_v15 = vld [vmem:[%s1394_s9 + $0xd4] sm:$0xf0] }
  0x32   : > { %v1018_v21 = vor.u32 %v1136_v15, %v1017_v14 }
  0x33   : > { %501 = vmatmul.bf16.vlgmr.msra.gmra.mxu0 %v914_v24  ;;  %541 = vmatmul.bf16.vlgmr.msra.gmra.mxu2 %v978_v25  ;;  %v961_v24 = vld [vmem:[%s1394_s9 + $0x60] sm:$0xf]  ;;  %v1122_v25 = vld [vmem:[%s1394_s9 + $0x64] sm:$0xf0] }
  0x34   : > { %590 = vmatmul.bf16.vlgmr.msra.gmra.mxu1 %v918_v26  ;;  %630 = vmatmul.bf16.vlgmr.msra.gmra.mxu3 %v982_v27  ;;  %v1025_v26 = vld [vmem:[%s1394_s9 + $0xe0] sm:$0xf]  ;;  %v1138_v27 = vld [vmem:[%s1394_s9 + $0xe4] sm:$0xf0]  ;;  %v962_v32 = vor.u32 %v1122_v25, %v961_v24 }
  0x35   : > { %v1026_v33 = vor.u32 %v1138_v27, %v1025_v26 }
  0x43   : > { %506 = vmatmul.bf16.gmra.mxu0 %v922_v36  ;;  %546 = vmatmul.bf16.gmra.mxu2 %v986_v37  ;;  %v969_v36 = vld [vmem:[%s1394_s9 + $0x70] sm:$0xf]  ;;  %v1124_v37 = vld [vmem:[%s1394_s9 + $0x74] sm:$0xf0] }
  0x44   : > { %595 = vmatmul.bf16.gmra.mxu1 %v926_v38  ;;  %635 = vmatmul.bf16.gmra.mxu3 %v990_v39  ;;  %v1033_v38 = vld [vmem:[%s1394_s9 + $0xf0] sm:$0xf]  ;;  %v1140_v39 = vld [vmem:[%s1394_s9 + $0xf4] sm:$0xf0]  ;;  %v970_v44 = vor.u32 %v1124_v37, %v969_v36  ;;  %s1230_s9 = sshra.s32 %s842_s16, 4  ;;  %s1231_s9 = int_to_ptr.hbm [resolvable:$true] %s1230_s9 }
  0x45   : > { %v1034_v45 = vor.u32 %v1140_v39, %v1033_v38  ;;  %s1232_s10 = scalar_lea.hbm %s1231_s9, 64  ;;  %p1237_p0 = scmp.lt.s32.totalorder %s1231_s9, %s1688_s3 }
  0x46   : > { %p1233_p11 = scmp.ne.s32.totalorder %s1231_s9, %s1232_s10  ;;  %p1238_p1 = scmp.lt.s32.totalorder %s1236_s19, %s1232_s10 }
  0x48   : > { %p1234_p12 = pnand %p1233_p11, %p1340_p5  ;;  %p1239_p2 = por %p1238_p1, %p1237_p0 }
  0x4a   : > { %p1235_p13 = pneg %p1234_p12 }
  0x4c   : > { %p1240_p3 = pnand %p1239_p2, %p1235_p13 }
  0x53   : > { %511 = vmatmul.bf16.gmra.mxu0 %v930_v48  ;;  %551 = vmatmul.bf16.gmra.mxu2 %v994_v49 }
  0x54   : > { %600 = vmatmul.bf16.gmra.mxu1 %v934_v50  ;;  %640 = vmatmul.bf16.gmra.mxu3 %v998_v51  ;;  %v1472_v50 = vld [vmem:[%s1687_s2] ss:$0 sm:$0xff] }
  0x63   : > { %516 = vmatmul.bf16.gmra.mxu0 %v938_v60  ;;  %556 = vmatmul.bf16.gmra.mxu2 %v1002_v61 }
  0x64   : > { %605 = vmatmul.bf16.gmra.mxu1 %v942_v62  ;;  %645 = vmatmul.bf16.gmra.mxu3 %v1006_v63 }
  0x73   : > { %521 = vmatmul.bf16.gmra.mxu0 %v946_v8  ;;  %561 = vmatmul.bf16.gmra.mxu2 %v1010_v9 }
  0x74   : > { %610 = vmatmul.bf16.gmra.mxu1 %v950_v10  ;;  %650 = vmatmul.bf16.gmra.mxu3 %v1014_v11 }
  0x83   : > { %526 = vmatmul.bf16.gmra.mxu0 %v954_v20  ;;  %566 = vmatmul.bf16.gmra.mxu2 %v1018_v21 }
  0x84   : > { %615 = vmatmul.bf16.gmra.mxu1 %v958_v22  ;;  %655 = vmatmul.bf16.gmra.mxu3 %v1022_v23  ;;  %v783_v23 = vlaneseq }
  0x86   : > { %v1496_v24 = vshrl.u32 %v783_v23, 7 }
  0x88   : > { %vm785_vm1 = vcmp.eq.s32.totalorder %v1496_v24, 0 }
  0x93   : > { %531 = vmatmul.bf16.gmra.mxu0 %v962_v32  ;;  %571 = vmatmul.bf16.gmra.mxu2 %v1026_v33 }
  0x94   : > { %620 = vmatmul.bf16.gmra.mxu1 %v966_v34  ;;  %660 = vmatmul.bf16.gmra.mxu3 %v1030_v35 }
  0xa3   : > { %536 = vmatmul.bf16.gmra.mxu0 %v970_v44  ;;  %576 = vmatmul.bf16.gmra.mxu2 %v1034_v45 }
  0xa4   : > { %625 = vmatmul.bf16.gmra.mxu1 %v974_v46  ;;  %665 = vmatmul.bf16.gmra.mxu3 %v1038_v47 }
  0xb0   : > { %v502_v48 = vpop.f32.mrf.mxu0 }
  0xb1   : > { %v591_v49 = vpop.f32.mrf.mxu1  ;;  %v503_v57 = vadd.f32 %v1472_v50, %v502_v48 }
  0xb3   : > { %v592_v62 = vadd.f32 %v591_v49, %v503_v57 }
  0xb5   : > { %v671_v3 = vmax.f32 %v592_v62, 0.0 }
  0xb6   : > { %v542_v51 = vpop.f32.mrf.mxu2 }
  0xb7   : > { %v543_v52 = vadd.f32 %v1472_v50, %v542_v51  ;;  %v631_v53 = vpop.f32.mrf.mxu3 }
  0xb8   : > { %v504_v54 = vpop.f32.mrf.mxu0 }
  0xb9   : > { %v1475_v55 = vadd.f32 %v631_v53, %v543_v52  ;;  %v593_v56 = vpop.f32.mrf.mxu1  ;;  %v505_v4 = vadd.f32 %v1472_v50, %v504_v54 }
  0xbb   : > { %v594_v10 = vadd.f32 %v593_v56, %v505_v4 }
  0xbd   : > { %v672_v15 = vmax.f32 %v594_v10, 0.0 }
  0xbe   : > { %v544_v58 = vpop.f32.mrf.mxu2 }
  0xbf   : > { %v545_v59 = vadd.f32 %v1472_v50, %v544_v58  ;;  %v633_v60 = vpop.f32.mrf.mxu3 }
  0xc0   : > { %v507_v61 = vpop.f32.mrf.mxu0 }
  0xc1   : > { %v1479_v63 = vadd.f32 %v633_v60, %v545_v59  ;;  %v508_v0 = vadd.f32 %v1472_v50, %v507_v61  ;;  %v596_v1 = vpop.f32.mrf.mxu1 }
  0xc3   : > { %v1482_v2 = vadd.f32 %v596_v1, %v508_v0 }
  0xc5   : > { %v673_v5 = vmax.f32 %v1482_v2, 0.0 }
  0xc6   : > { %v547_v6 = vpop.f32.mrf.mxu2 }
  0xc7   : > { %v703_v7 = vmax.f32 %v671_v3, %v673_v5  ;;  %v636_v8 = vpop.f32.mrf.mxu3  ;;  %v548_v44 = vadd.f32 %v1472_v50, %v547_v6 }
  0xc8   : > { %v509_v9 = vpop.f32.mrf.mxu0 }
  0xc9   : > { %v719_v11 = vmax.f32 %v703_v7, 0.0  ;;  %v510_v12 = vadd.f32 %v1472_v50, %v509_v9  ;;  %v598_v13 = vpop.f32.mrf.mxu1  ;;  %v1519_v54 = vadd.f32 %v636_v8, %v548_v44 }
  0xcb   : > { %736 = vst.msk [vmem:[#allocation2] sm:$0xff] %vm735_vm0, %v719_v11  ;;  %v1488_v14 = vadd.f32 %v598_v13, %v510_v12  ;;  %v689_v3 = vmax.f32 %v1519_v54, 0.0 }
  0xcd   : > { %v674_v16 = vmax.f32 %v1488_v14, 0.0 }
  0xce   : > { %v549_v17 = vpop.f32.mrf.mxu2 }
  0xcf   : > { %v704_v18 = vmax.f32 %v672_v15, %v674_v16  ;;  %v1493_v19 = vpop.f32.mrf.mxu3  ;;  %v550_v4 = vadd.f32 %v1472_v50, %v549_v17 }
  0xd0   : > { %v512_v20 = vpop.f32.mrf.mxu0 }
  0xd1   : > { %v720_v21 = vmax.f32 %v704_v18, 0.0  ;;  %v601_v22 = vpop.f32.mrf.mxu1  ;;  %v513_v34 = vadd.f32 %v1472_v50, %v512_v20  ;;  %v1540_v17 = vadd.f32 %v1493_v19, %v550_v4 }
  0xd3   : > { %737 = vst.msk [vmem:[#allocation2 + $0x8] sm:$0xff] %vm735_vm0, %v720_v21  ;;  %v602_v39 = vadd.f32 %v601_v22, %v513_v34 }
  0xd5   : > { %v675_v45 = vmax.f32 %v602_v39, 0.0 }
  0xd6   : > { %v552_v25 = vpop.f32.mrf.mxu2 }
  0xd7   : > { %v641_v26 = vpop.f32.mrf.mxu3  ;;  %v553_v42 = vadd.f32 %v1472_v50, %v552_v25  ;;  %v690_v25 = vmax.f32 %v1540_v17, 0.0 }
  0xd8   : > { %v514_v27 = vpop.f32.mrf.mxu0 }
  0xd9   : > { %v603_v28 = vpop.f32.mrf.mxu1  ;;  %v515_v46 = vadd.f32 %v1472_v50, %v514_v27  ;;  %v642_v49 = vadd.f32 %v641_v26, %v553_v42 }
  0xda   : > { %v752_v29 = vld [vmem:[#allocation2] ss:$2 sm:$0xff]  ;;  %v768_v30 = vld [vmem:[#allocation2 + $0x1] ss:$2 sm:$0xff] }
  0xdb   : > { %v786_v31 = vrot.slane %v768_v30, 7  ;;  %v802_v32 = vmax.f32 %v752_v29, %v768_v30  ;;  %v604_v57 = vadd.f32 %v603_v28, %v515_v46  ;;  %v691_v62 = vmax.f32 %v642_v49, 0.0 }
  0xdd   : > { %v794_v33 = vsel %vm785_vm1, 0.0, %v786_v31  ;;  %v676_v6 = vmax.f32 %v604_v57, 0.0 }
  0xde   : > { %v810_v35 = vmax.f32 %v802_v32, %v794_v33  ;;  %v554_v36 = vpop.f32.mrf.mxu2 }
  0xdf   : > { %v643_v37 = vpop.f32.mrf.mxu3  ;;  %v555_v0 = vadd.f32 %v1472_v50, %v554_v36 }
  0xe0   : > { %v517_v38 = vpop.f32.mrf.mxu0  ;;  %818 = vst.msk [vmem:[%s1505_s29] sm:$0xff] %vm735_vm0, %v810_v35 }
  0xe1   : > { %v518_v40 = vadd.f32 %v1472_v50, %v517_v38  ;;  %v606_v41 = vpop.f32.mrf.mxu1  ;;  %v644_v9 = vadd.f32 %v643_v37, %v555_v0 }
  0xe3   : > { %v1511_v43 = vadd.f32 %v606_v41, %v518_v40  ;;  %v692_v22 = vmax.f32 %v644_v9, 0.0 }
  0xe5   : > { %v677_v47 = vmax.f32 %v1511_v43, 0.0 }
  0xe6   : > { %v557_v48 = vpop.f32.mrf.mxu2 }
  0xe7   : > { %v705_v51 = vmax.f32 %v675_v45, %v677_v47  ;;  %v558_v52 = vadd.f32 %v1472_v50, %v557_v48  ;;  %v646_v53 = vpop.f32.mrf.mxu3 }
  0xe8   : > { %v519_v56 = vpop.f32.mrf.mxu0 }
  0xe9   : > { %v721_v58 = vmax.f32 %v705_v51, %v673_v5  ;;  %v1521_v59 = vadd.f32 %v646_v53, %v558_v52  ;;  %v520_v60 = vadd.f32 %v1472_v50, %v519_v56  ;;  %v608_v61 = vpop.f32.mrf.mxu1 }
  0xeb   : > { %738 = vst.msk [vmem:[#allocation2 + $0x10] sm:$0xff] %vm735_vm0, %v721_v58  ;;  %v693_v1 = vmax.f32 %v1521_v59, 0.0  ;;  %v1527_v2 = vadd.f32 %v608_v61, %v520_v60 }
  0xed   : > { %v713_v5 = vmax.f32 %v691_v62, %v693_v1  ;;  %v678_v7 = vmax.f32 %v1527_v2, 0.0 }
  0xee   : > { %v559_v8 = vpop.f32.mrf.mxu2 }
  0xef   : > { %v729_v10 = vmax.f32 %v713_v5, %v689_v3  ;;  %v706_v11 = vmax.f32 %v676_v6, %v678_v7  ;;  %v560_v12 = vadd.f32 %v1472_v50, %v559_v8  ;;  %v648_v13 = vpop.f32.mrf.mxu3 }
  0xf0   : > { %v522_v15 = vpop.f32.mrf.mxu0 }
  0xf1   : > { %746 = vst.msk [vmem:[#allocation2 + $0x50] sm:$0xff] %vm735_vm0, %v729_v10  ;;  %v722_v18 = vmax.f32 %v706_v11, %v674_v16  ;;  %v1545_v20 = vadd.f32 %v648_v13, %v560_v12  ;;  %v611_v21 = vpop.f32.mrf.mxu1  ;;  %v523_v34 = vadd.f32 %v1472_v50, %v522_v15 }
  0xf3   : > { %739 = vst.msk [vmem:[#allocation2 + $0x18] sm:$0xff] %vm735_vm0, %v722_v18  ;;  %v694_v23 = vmax.f32 %v1545_v20, 0.0  ;;  %v612_v44 = vadd.f32 %v611_v21, %v523_v34 }
  0xf5   : > { %v714_v26 = vmax.f32 %v692_v22, %v694_v23  ;;  %v679_v53 = vmax.f32 %v612_v44, 0.0 }
  0xf6   : > { %v562_v19 = vpop.f32.mrf.mxu2 }
  0xf7   : > { %v730_v27 = vmax.f32 %v714_v26, %v690_v25  ;;  %v651_v28 = vpop.f32.mrf.mxu3  ;;  %v563_v49 = vadd.f32 %v1472_v50, %v562_v19 }
  0xf8   : > { %v524_v14 = vpop.f32.mrf.mxu0 }
  0xf9   : > { %747 = vst.msk [vmem:[#allocation2 + $0x58] sm:$0xff] %vm735_vm0, %v730_v27  ;;  %v613_v16 = vpop.f32.mrf.mxu1  ;;  %v525_v56 = vadd.f32 %v1472_v50, %v524_v14  ;;  %v652_v60 = vadd.f32 %v651_v28, %v563_v49 }
  0xfa   : > { %v754_v29 = vld [vmem:[#allocation2 + $0x10] ss:$2 sm:$0xff]  ;;  %v770_v30 = vld [vmem:[#allocation2 + $0x11] ss:$2 sm:$0xff] }
  0xfb   : > { %v787_v31 = vrot.slane %v770_v30, 7  ;;  %v803_v32 = vmax.f32 %v754_v29, %v770_v30  ;;  %v614_v6 = vadd.f32 %v613_v16, %v525_v56  ;;  %v695_v11 = vmax.f32 %v652_v60, 0.0 }
  0xfc   : > { %v687_v56 = vmax.f32 %v1475_v55, 0.0 }
  0xfd   : > { %v795_v33 = vsel %vm785_vm1, 0.0, %v787_v31  ;;  %v680_v18 = vmax.f32 %v614_v6, 0.0 }
  0xfe   : > { %v811_v35 = vmax.f32 %v803_v32, %v795_v33  ;;  %v564_v36 = vpop.f32.mrf.mxu2 }
  0xff   : > { %v653_v37 = vpop.f32.mrf.mxu3  ;;  %v565_v12 = vadd.f32 %v1472_v50, %v564_v36 }
 0x100   : > { %v762_v38 = vld [vmem:[#allocation2 + $0x50] ss:$2 sm:$0xff]  ;;  %v778_v39 = vld [vmem:[#allocation2 + $0x51] ss:$2 sm:$0xff]  ;;  %v527_v40 = vpop.f32.mrf.mxu0  ;;  %819 = vst.msk [vmem:[%s1505_s29 + $0x8] sm:$0xff] %vm735_vm0, %v811_v35 }
 0x101   : > { %v791_v41 = vrot.slane %v778_v39, 7  ;;  %v807_v42 = vmax.f32 %v762_v38, %v778_v39  ;;  %v528_v45 = vadd.f32 %v1472_v50, %v527_v40  ;;  %v616_v46 = vpop.f32.mrf.mxu1  ;;  %v654_v22 = vadd.f32 %v653_v37, %v565_v12 }
 0x103   : > { %v799_v48 = vsel %vm785_vm1, 0.0, %v791_v41  ;;  %v1564_v51 = vadd.f32 %v616_v46, %v528_v45  ;;  %v696_v31 = vmax.f32 %v654_v22, 0.0 }
 0x104   : > { %v815_v52 = vmax.f32 %v807_v42, %v799_v48 }
 0x105   : > { %v681_v57 = vmax.f32 %v1564_v51, 0.0 }
 0x106   : > { %v567_v58 = vpop.f32.mrf.mxu2  ;;  %823 = vst.msk [vmem:[%s1505_s29 + $0x28] sm:$0xff] %vm735_vm0, %v815_v52 }
 0x107   : > { %v707_v61 = vmax.f32 %v679_v53, %v681_v57  ;;  %v568_v62 = vadd.f32 %v1472_v50, %v567_v58  ;;  %v656_v0 = vpop.f32.mrf.mxu3 }
 0x108   : > { %v529_v4 = vpop.f32.mrf.mxu0 }
 0x109   : > { %v723_v5 = vmax.f32 %v707_v61, %v677_v47  ;;  %v1575_v8 = vadd.f32 %v656_v0, %v568_v62  ;;  %v530_v9 = vadd.f32 %v1472_v50, %v529_v4  ;;  %v618_v10 = vpop.f32.mrf.mxu1  ;;  %v711_v0 = vmax.f32 %v687_v56, %v689_v3 }
 0x10b   : > { %740 = vst.msk [vmem:[#allocation2 + $0x20] sm:$0xff] %vm735_vm0, %v723_v5  ;;  %v697_v13 = vmax.f32 %v1575_v8, 0.0  ;;  %v1581_v15 = vadd.f32 %v618_v10, %v530_v9 }
 0x10d   : > { %v715_v21 = vmax.f32 %v695_v11, %v697_v13  ;;  %v682_v43 = vmax.f32 %v1581_v15, 0.0 }
 0x10e   : > { %v569_v47 = vpop.f32.mrf.mxu2 }
 0x10f   : > { %v731_v26 = vmax.f32 %v715_v21, %v693_v1  ;;  %v708_v19 = vmax.f32 %v680_v18, %v682_v43  ;;  %v570_v27 = vadd.f32 %v1472_v50, %v569_v47  ;;  %v658_v28 = vpop.f32.mrf.mxu3 }
 0x110   : > { %v532_v14 = vpop.f32.mrf.mxu0 }
 0x111   : > { %748 = vst.msk [vmem:[#allocation2 + $0x60] sm:$0xff] %vm735_vm0, %v731_v26  ;;  %v724_v16 = vmax.f32 %v708_v19, %v678_v7  ;;  %v1594_v29 = vadd.f32 %v658_v28, %v570_v27  ;;  %v621_v30 = vpop.f32.mrf.mxu1  ;;  %v533_v40 = vadd.f32 %v1472_v50, %v532_v14  ;;  %v688_v27 = vmax.f32 %v1479_v63, 0.0 }
 0x113   : > { %741 = vst.msk [vmem:[#allocation2 + $0x28] sm:$0xff] %vm735_vm0, %v724_v16  ;;  %v698_v59 = vmax.f32 %v1594_v29, 0.0  ;;  %v622_v49 = vadd.f32 %v621_v30, %v533_v40  ;;  %v712_v30 = vmax.f32 %v688_v27, %v690_v25 }
 0x115   : > { %v716_v1 = vmax.f32 %v696_v31, %v698_v59  ;;  %v683_v4 = vmax.f32 %v622_v49, 0.0 }
 0x116   : > { %v572_v32 = vpop.f32.mrf.mxu2 }
 0x117   : > { %v732_v33 = vmax.f32 %v716_v1, %v694_v23  ;;  %v661_v34 = vpop.f32.mrf.mxu3  ;;  %v573_v60 = vadd.f32 %v1472_v50, %v572_v32 }
 0x118   : > { %v534_v35 = vpop.f32.mrf.mxu0 }
 0x119   : > { %749 = vst.msk [vmem:[#allocation2 + $0x68] sm:$0xff] %vm735_vm0, %v732_v33  ;;  %v623_v2 = vpop.f32.mrf.mxu1  ;;  %v535_v6 = vadd.f32 %v1472_v50, %v534_v35  ;;  %v662_v10 = vadd.f32 %v661_v34, %v573_v60 }
 0x11a   : > { %v756_v7 = vld [vmem:[#allocation2 + $0x20] ss:$2 sm:$0xff]  ;;  %v772_v36 = vld [vmem:[#allocation2 + $0x21] ss:$2 sm:$0xff] }
 0x11b   : > { %v788_v37 = vrot.slane %v772_v36, 7  ;;  %v804_v38 = vmax.f32 %v756_v7, %v772_v36  ;;  %v624_v47 = vadd.f32 %v623_v2, %v535_v6  ;;  %v699_v28 = vmax.f32 %v662_v10, 0.0 }
 0x11d   : > { %v796_v39 = vsel %vm785_vm1, 0.0, %v788_v37  ;;  %v684_v51 = vmax.f32 %v624_v47, 0.0 }
 0x11e   : > { %v812_v41 = vmax.f32 %v804_v38, %v796_v39  ;;  %v574_v42 = vpop.f32.mrf.mxu2 }
 0x11f   : > { %v663_v44 = vpop.f32.mrf.mxu3  ;;  %v575_v26 = vadd.f32 %v1472_v50, %v574_v42 }
 0x120   : > { %v764_v20 = vld [vmem:[#allocation2 + $0x60] ss:$2 sm:$0xff]  ;;  %v780_v23 = vld [vmem:[#allocation2 + $0x61] ss:$2 sm:$0xff]  ;;  %v537_v45 = vpop.f32.mrf.mxu0  ;;  %820 = vst.msk [vmem:[%s1505_s29 + $0x10] sm:$0xff] %vm735_vm0, %v812_v41 }
 0x121   : > { %v792_v46 = vrot.slane %v780_v23, 7  ;;  %v808_v48 = vmax.f32 %v764_v20, %v780_v23  ;;  %v538_v52 = vadd.f32 %v1472_v50, %v537_v45  ;;  %v626_v53 = vpop.f32.mrf.mxu1  ;;  %v664_v1 = vadd.f32 %v663_v44, %v575_v26 }
 0x123   : > { %v800_v58 = vsel %vm785_vm1, 0.0, %v792_v46  ;;  %v627_v61 = vadd.f32 %v626_v53, %v538_v52  ;;  %v700_v7 = vmax.f32 %v664_v1, 0.0 }
 0x124   : > { %v816_v62 = vmax.f32 %v808_v48, %v800_v58 }
 0x125   : > { %v685_v5 = vmax.f32 %v627_v61, 0.0 }
 0x126   : > { %v577_v9 = vpop.f32.mrf.mxu2  ;;  %824 = vst.msk [vmem:[%s1505_s29 + $0x30] sm:$0xff] %vm735_vm0, %v816_v62 }
 0x127   : > { %v709_v11 = vmax.f32 %v683_v4, %v685_v5  ;;  %v727_v55 = vmax.f32 %v711_v0, %v685_v5  ;;  %v578_v12 = vadd.f32 %v1472_v50, %v577_v9  ;;  %v666_v18 = vpop.f32.mrf.mxu3 }
 0x128   : > { %v539_v21 = vpop.f32.mrf.mxu0 }
 0x129   : > { %v725_v22 = vmax.f32 %v709_v11, %v681_v57  ;;  %744 = vst.msk [vmem:[#allocation2 + $0x40] sm:$0xff] %vm735_vm0, %v727_v55  ;;  %v667_v54 = vadd.f32 %v666_v18, %v578_v12  ;;  %v540_v3 = vadd.f32 %v1472_v50, %v539_v21  ;;  %v628_v19 = vpop.f32.mrf.mxu1 }
 0x12b   : > { %742 = vst.msk [vmem:[#allocation2 + $0x30] sm:$0xff] %vm735_vm0, %v725_v22  ;;  %v701_v14 = vmax.f32 %v667_v54, 0.0  ;;  %v629_v16 = vadd.f32 %v628_v19, %v540_v3 }
 0x12d   : > { %v717_v57 = vmax.f32 %v699_v28, %v701_v14  ;;  %v686_v31 = vmax.f32 %v629_v16, 0.0 }
 0x12e   : > { %v579_v32 = vpop.f32.mrf.mxu2 }
 0x12f   : > { %v733_v33 = vmax.f32 %v717_v57, %v697_v13  ;;  %v710_v34 = vmax.f32 %v684_v51, %v686_v31  ;;  %v728_v35 = vmax.f32 %v712_v30, %v686_v31  ;;  %v580_v63 = vadd.f32 %v1472_v50, %v579_v32  ;;  %v668_v2 = vpop.f32.mrf.mxu3 }
 0x131   : > { %750 = vst.msk [vmem:[#allocation2 + $0x70] sm:$0xff] %vm735_vm0, %v733_v33  ;;  %v726_v17 = vmax.f32 %v710_v34, %v682_v43  ;;  %v669_v25 = vadd.f32 %v668_v2, %v580_v63 }
 0x132   : > { %745 = vst.msk [vmem:[#allocation2 + $0x48] sm:$0xff] %vm735_vm0, %v728_v35 }
 0x133   : > { %743 = vst.msk [vmem:[#allocation2 + $0x38] sm:$0xff] %vm735_vm0, %v726_v17  ;;  %v702_v36 = vmax.f32 %v669_v25, 0.0 }
 0x135   : > { %v718_v8 = vmax.f32 %v700_v7, %v702_v36 }
 0x137   : > { %v734_v13 = vmax.f32 %v718_v8, %v698_v59 }
 0x139   : > { %v760_v50 = vld [vmem:[#allocation2 + $0x40] ss:$2 sm:$0xff]  ;;  %v776_v37 = vld [vmem:[#allocation2 + $0x41] ss:$2 sm:$0xff]  ;;  %751 = vst.msk [vmem:[#allocation2 + $0x78] sm:$0xff] %vm735_vm0, %v734_v13 }
 0x13a   : > { %v758_v15 = vld [vmem:[#allocation2 + $0x30] ss:$2 sm:$0xff]  ;;  %v774_v43 = vld [vmem:[#allocation2 + $0x31] ss:$2 sm:$0xff]  ;;  %v790_v38 = vrot.slane %v776_v37, 7  ;;  %v806_v39 = vmax.f32 %v760_v50, %v776_v37 }
 0x13b   : > { %v789_v40 = vrot.slane %v774_v43, 7  ;;  %v805_v41 = vmax.f32 %v758_v15, %v774_v43 }
 0x13c   : > { %v798_v42 = vsel %vm785_vm1, 0.0, %v790_v38 }
 0x13d   : > { %v797_v29 = vsel %vm785_vm1, 0.0, %v789_v40  ;;  %v814_v59 = vmax.f32 %v806_v39, %v798_v42 }
 0x13e   : > { %v813_v44 = vmax.f32 %v805_v41, %v797_v29 }
 0x13f   : > { %822 = vst.msk [vmem:[%s1505_s29 + $0x20] sm:$0xff] %vm735_vm0, %v814_v59 }
 0x140   : > { %v766_v20 = vld [vmem:[#allocation2 + $0x70] ss:$2 sm:$0xff]  ;;  %v782_v23 = vld [vmem:[#allocation2 + $0x71] ss:$2 sm:$0xff]  ;;  %821 = vst.msk [vmem:[%s1505_s29 + $0x18] sm:$0xff] %vm735_vm0, %v813_v44 }
 0x141   : > { %v793_v45 = vrot.slane %v782_v23, 7  ;;  %v809_v46 = vmax.f32 %v766_v20, %v782_v23 }
 0x143   : > { %v801_v48 = vsel %vm785_vm1, 0.0, %v793_v45 }
 0x144   : > { %v817_v49 = vmax.f32 %v809_v46, %v801_v48 }
 0x146   : > { %825 = vst.msk [vmem:[%s1505_s29 + $0x38] sm:$0xff] %vm735_vm0, %v817_v49 }
 0x147   : > { %1243 = shalt.err (!%p1240_p3)
}
 0x148   : > { %s1280_s25 = smov 128   ;;  %s1281_s26 = smov 8  }
 0x149   : > { %1174 = dma.vmem_to_hbm [thread:$0]  (%p1340_p5), %s840_s7, 1024, %s842_s16, %s827_s8, %s1280_s25, %s1280_s25, %s1281_s26  }
 0x14a PF: > { %p1180_p4 = scmp.ge.s32.totalorder %s1278_s15, 2  ;;  %s856_s27 = sand.u32 1, %s1266_s12  }
 0x14b   : > { %s857_s28 = scalar_lea.sflag [#allocation4], %s856_s27 }
 0x14c   : > { %p1177_p7 = pnand %p1180_p4, %p1344_p6 }
 0x14e   : > { %p1178_p8 = pneg %p1177_p7 }
 0x150   : > { %1261 = dma.done.wait (%p1178_p8), %s857_s28, 1024  }
 0x151   : > { %1263 = vsyncadd (%p1178_p8), %s857_s28, 4294966272  ;;  %p13_p9 = scmp.ge.s32.totalorder %s1327_s18, 4   ;;  %s1691_s12 = smov %s1270_s13 }
 0x152   : > { %s1692_s13 = smov %s1274_s14  ;;  %s1693_s14 = smov %s1338_s21 }
 0x153   : > { %s1694_s15 = smov %s1327_s18  ;;  %15 = sbr.rel (!%p13_p9) target bundleno = 3 (0x3), region = 82 }
 0x158   :  { %863 = vsyncpa [#allocation4], 1 }
 0x159   :  { %865 = vsyncpa [#allocation4 + $0x1], 1 }

</bundles_post_ra>
